<compile_context>
chip_gen: v7x
topology: tpu7x:2x2x1
jax: 0.10.0
libtpu: 0.0.40
codegen_flags: <defaults>
</compile_context>

<pallas_src>
import functools

import jax
import jax.numpy as jnp
import numpy as np
from jax.experimental import pallas as pl
from jax.experimental.pallas import tpu as pltpu


def _circular_pad_kernel(x_ref, o_ref, *, pad_before, pad_after):
    """One (row_tile, W) -> (row_tile, W_out) tile.

    Builds the circularly padded rows in registers and issues ONE lane-dense
    full-tile store (no masked vst / misaligned partial stores).
    """
    x = x_ref[...]
    W = x.shape[-1]
    parts = []
    if pad_after > 0:                      # left pad comes from the row tail
        parts.append(x[:, W - pad_after:])
    parts.append(x)                        # body
    if pad_before > 0:                     # right pad comes from the row head
        parts.append(x[:, :pad_before])
    o_ref[...] = jnp.concatenate(parts, axis=-1) if len(parts) > 1 else x


# Pure data-movement kernel: size blocks for HBM roofline, not compute.
_SMALL_BYTES = 2 * 1024 * 1024          # single-block fast path threshold
_TARGET_BLOCK_BYTES = 4 * 1024 * 1024   # ~4 MiB in+out per block -> <=8 MiB
                                        # double-buffered (fits every gen's
                                        # scoped-VMEM default, incl. v5e/v7x)


def _choose_row_tile(rows, row_bytes, sub):
    """Largest sublane-aligned row tile that fits the VMEM target and divides
    `rows` exactly (so no host-side pad copy / output slice is needed)."""
    cap = max(sub, (_TARGET_BLOCK_BYTES // row_bytes) // sub * sub)
    # Keep >=2 grid steps when possible so the parallel axis can be sharded
    # across the two TensorCores on v7x.
    half = (rows // 2) // sub * sub
    if half >= sub:
        cap = min(cap, half)
    t = cap
    while t >= sub:
        if rows % t == 0:
            return t, False                # exact divisor: no padding needed
        t -= sub
    return cap, True                       # no aligned divisor: caller pads


def circular_pad_last_dim(x, pad_before=1, pad_after=1):
    """Pallas TPU implementation of CircularPadLastDim.forward."""
    assert x.ndim in (4, 5), f"expected 4-D or 5-D input, got {x.ndim}-D"
    W = x.shape[-1]
    # Like PyTorch's circular mode, a pad larger than W cannot wrap correctly.
    assert 0 <= pad_after <= W and 0 <= pad_before <= W, (
        f"circular pad ({pad_after},{pad_before}) must be <= last dim ({W})")
    W_out = W + pad_before + pad_after

    lead = x.shape[:-1]
    rows = int(np.prod(lead))
    dtype_bytes = jnp.dtype(x.dtype).itemsize
    sub = 8 * max(1, 4 // dtype_bytes)     # sublane multiple: 8 f32, 16 bf16, 32 i8
    row_bytes = (W + W_out) * dtype_bytes  # in+out bytes per row

    x2 = x.reshape(rows, W)

    if rows * row_bytes <= _SMALL_BYTES or rows <= sub:
        # Tiny problem: one block covering the whole array, zero per-step
        # overhead, and full-dim blocks are exempt from the (8,128) rule.
        row_tile, needs_pad = rows, False
    else:
        row_tile, needs_pad = _choose_row_tile(rows, row_bytes, sub)

    padded_rows = rows
    if needs_pad:
        padded_rows = pl.cdiv(rows, row_tile) * row_tile
        x2 = jnp.pad(x2, ((0, padded_rows - rows), (0, 0)))

    out = pl.pallas_call(
        functools.partial(
            _circular_pad_kernel, pad_before=pad_before, pad_after=pad_after
        ),
        out_shape=jax.ShapeDtypeStruct((padded_rows, W_out), x.dtype),
        grid=(padded_rows // row_tile,),
        in_specs=[pl.BlockSpec((row_tile, W), lambda i: (i, 0))],
        out_specs=pl.BlockSpec((row_tile, W_out), lambda i: (i, 0)),
        compiler_params=pltpu.CompilerParams(
            dimension_semantics=("parallel",),
            vmem_limit_bytes=32 * 1024 * 1024,   # explicit; safe on v5e/v6e/v7x
        ),
    )(x2)

    if needs_pad:
        out = out[:rows]
    return out.reshape(lead + (W_out,))


def _reference_circular_pad(x, pad_before=1, pad_after=1):
    """Pure-JAX reference (same semantics as the PyTorch module)."""
    left = x[..., x.shape[-1] - pad_after:]
    right = x[..., :pad_before]
    return jnp.concatenate([left, x, right], axis=-1)


if __name__ == "__main__":
    key = jax.random.PRNGKey(0)
    k4, k5, k6 = jax.random.split(key, 3)

    # 4-D NCHW (small -> single-block fast path)
    x4 = jax.random.normal(k4, (2, 4, 16, 16), dtype=jnp.float32)
    y4 = jax.block_until_ready(circular_pad_last_dim(x4, pad_before=1, pad_after=1))
    ref4 = _reference_circular_pad(x4, 1, 1)
    assert y4.shape == (2, 4, 16, 18), y4.shape
    np.testing.assert_allclose(np.asarray(y4), np.asarray(ref4), rtol=0, atol=0)

    # 5-D NCDHW
    x5 = jax.random.normal(k5, (2, 3, 4, 8, 16), dtype=jnp.float32)
    y5 = jax.block_until_ready(circular_pad_last_dim(x5, pad_before=1, pad_after=1))
    ref5 = _reference_circular_pad(x5, 1, 1)
    assert y5.shape == (2, 3, 4, 8, 18), y5.shape
    np.testing.assert_allclose(np.asarray(y5), np.asarray(ref5), rtol=0, atol=0)

    # medium 4-D case exercising the multi-step tiled path (grid >= 2)
    x6 = jax.random.normal(k6, (4, 8, 128, 128), dtype=jnp.float32)
    y6 = jax.block_until_ready(circular_pad_last_dim(x6, pad_before=1, pad_after=1))
    ref6 = _reference_circular_pad(x6, 1, 1)
    assert y6.shape == (4, 8, 128, 130), y6.shape
    np.testing.assert_allclose(np.asarray(y6), np.asarray(ref6), rtol=0, atol=0)

    # bf16 (sublane-packing path)
    x7 = x4.astype(jnp.bfloat16)
    y7 = jax.block_until_ready(circular_pad_last_dim(x7, pad_before=1, pad_after=1))
    ref7 = _reference_circular_pad(x7, 1, 1)
    np.testing.assert_allclose(
        np.asarray(y7.astype(jnp.float32)),
        np.asarray(ref7.astype(jnp.float32)),
        rtol=0, atol=0,
    )

    print("KERNEL_OK")
</pallas_src>

<mosaic_0001>
module attributes {stable_mosaic.version = 11 : i64} {
  func.func @_circular_pad_kernel(%arg0: i32, %arg1: memref<128x16xf32, #tpu.memory_space<vmem>>, %arg2: memref<128x18xf32, #tpu.memory_space<vmem>>) attributes {dimension_semantics = [#tpu.dimension_semantics<parallel>], iteration_bounds = array<i64: 1>, scalar_prefetch = 0 : i64, scratch_operands = 0 : i64, tpu.core_type = #tpu.core_type<tc>, window_params = [{transform_indices = @transform_0, window_bounds = array<i64: 128, 16>}, {transform_indices = @transform_1, window_bounds = array<i64: 128, 18>}]} {
    %c0 = arith.constant 0 : index
    %c0_0 = arith.constant 0 : index
    %0 = vector.load %arg1[%c0, %c0_0] : memref<128x16xf32, #tpu.memory_space<vmem>>, vector<128x16xf32>
    %1 = vector.extract_strided_slice %0 {offsets = [0, 15], sizes = [128, 1], strides = [1, 1]} : vector<128x16xf32> to vector<128x1xf32>
    %2 = vector.extract_strided_slice %0 {offsets = [0, 0], sizes = [128, 1], strides = [1, 1]} : vector<128x16xf32> to vector<128x1xf32>
    %3 = tpu.concatenate %1, %0, %2 in 1 : vector<128x1xf32>, vector<128x16xf32>, vector<128x1xf32> -> vector<128x18xf32>
    %c0_1 = arith.constant 0 : index
    %c0_2 = arith.constant 0 : index
    %4 = vector.load %arg2[%c0_1, %c0_2] : memref<128x18xf32, #tpu.memory_space<vmem>>, vector<128x18xf32>
    tpu.vector_store %arg2[%c0_1, %c0_2], %3 {strides = array<i32>} : memref<128x18xf32, #tpu.memory_space<vmem>>, vector<128x18xf32>,
    return
  }
  func.func @transform_0(%arg0: i32) -> (i32, i32) {
    %c0_i32 = arith.constant 0 : i32
    %c0_i32_0 = arith.constant 0 : i32
    return %arg0, %c0_i32 : i32, i32
  }
  func.func @transform_1(%arg0: i32) -> (i32, i32) {
    %c0_i32 = arith.constant 0 : i32
    %c0_i32_0 = arith.constant 0 : i32
    return %arg0, %c0_i32 : i32, i32
  }
}

</mosaic_0001>

<bundles_post_ra>
// kernel: tpu_custom_call.1
= control target key start
LH: loop header
LB: loop body
LE: loop exit
PB: predicated region body
PF: predicated region fallthrough
CT: control target
= control target key end

     0   :  { %s242_s10 = smov 113   ;;  %s243_s11 = smov 1   ;;  %vm184_vm0 = vcmask 7168   ;;  %vm201_vm1 = vcmask 138240   ;;  %vm218_vm2 = vcmask 146432   ;;  %s423_s0 = inlined_call_operand.vmem [shape: f32[128,16], index: 0, kind: input, shape index: {}]   ;;  %s424_s1 = inlined_call_operand.vmem [shape: f32[128,18], index: 1, kind: output, shape index: {}]  }
   0x1   :  { %v10_v0 = vld [vmem:[%s423_s0 + $0x10] sm:$0xff]  ;;  %v8_v1 = vld [vmem:[%s423_s0] sm:$0xff]  ;;  %v11_v2 = vld [vmem:[%s423_s0 + $0x18] sm:$0xff] }
   0x2   :  { %44 = vrot.lane.b32.xlu1 %v10_v0, %s242_s10  ;;  %40 = vrot.lane.b32.xlu0 %v8_v1, %s242_s10  ;;  %v9_v3 = vld [vmem:[%s423_s0 + $0x8] sm:$0xff]  ;;  %v12_v5 = vld [vmem:[%s423_s0 + $0x20] sm:$0xff] }
   0x3   :  { %v13_v4 = vld [vmem:[%s423_s0 + $0x28] sm:$0xff]  ;;  %v15_v6 = vld [vmem:[%s423_s0 + $0x38] sm:$0xff]  ;;  %v14_v7 = vld [vmem:[%s423_s0 + $0x30] sm:$0xff] }
   0x4   :  { %v17_v8 = vld [vmem:[%s423_s0 + $0x48] sm:$0xff]  ;;  %v16_v9 = vld [vmem:[%s423_s0 + $0x40] sm:$0xff]  ;;  %v19_v10 = vld [vmem:[%s423_s0 + $0x58] sm:$0xff] }
   0x5   :  { %v18_v11 = vld [vmem:[%s423_s0 + $0x50] sm:$0xff]  ;;  %v21_v12 = vld [vmem:[%s423_s0 + $0x68] sm:$0xff]  ;;  %v20_v13 = vld [vmem:[%s423_s0 + $0x60] sm:$0xff] }
   0x6   :  { %46 = vrot.lane.b32.xlu1 %v11_v2, %s242_s10  ;;  %42 = vrot.lane.b32.xlu0 %v9_v3, %s242_s10  ;;  %v23_v14 = vld [vmem:[%s423_s0 + $0x78] sm:$0xff]  ;;  %v22_v15 = vld [vmem:[%s423_s0 + $0x70] sm:$0xff]  ;;  %s244_s0 = smov 17  }
   0xa   :  { %50 = vrot.lane.b32.xlu1 %v13_v4, %s242_s10  ;;  %48 = vrot.lane.b32.xlu0 %v12_v5, %s242_s10 }
   0xe   :  { %54 = vrot.lane.b32.xlu1 %v15_v6, %s242_s10  ;;  %52 = vrot.lane.b32.xlu0 %v14_v7, %s242_s10 }
  0x12   :  { %58 = vrot.lane.b32.xlu1 %v17_v8, %s242_s10  ;;  %56 = vrot.lane.b32.xlu0 %v16_v9, %s242_s10 }
  0x16   :  { %62 = vrot.lane.b32.xlu1 %v19_v10, %s242_s10  ;;  %60 = vrot.lane.b32.xlu0 %v18_v11, %s242_s10 }
  0x1a   :  { %66 = vrot.lane.b32.xlu1 %v21_v12, %s242_s10  ;;  %64 = vrot.lane.b32.xlu0 %v20_v13, %s242_s10 }
  0x1e   :  { %70 = vrot.lane.b32.xlu1 %v23_v14, %s242_s10  ;;  %68 = vrot.lane.b32.xlu0 %v22_v15, %s242_s10 }
  0x22   :  { %90 = vrot.lane.b32.xlu1 %v9_v3, %s243_s11  ;;  %88 = vrot.lane.b32.xlu0 %v8_v1, %s243_s11 }
  0x26   :  { %94 = vrot.lane.b32.xlu1 %v11_v2, %s243_s11  ;;  %92 = vrot.lane.b32.xlu0 %v10_v0, %s243_s11 }
  0x2a   :  { %98 = vrot.lane.b32.xlu1 %v13_v4, %s243_s11  ;;  %96 = vrot.lane.b32.xlu0 %v12_v5, %s243_s11 }
  0x2e   :  { %102 = vrot.lane.b32.xlu1 %v15_v6, %s243_s11  ;;  %100 = vrot.lane.b32.xlu0 %v14_v7, %s243_s11 }
  0x32   :  { %106 = vrot.lane.b32.xlu1 %v17_v8, %s243_s11  ;;  %104 = vrot.lane.b32.xlu0 %v16_v9, %s243_s11 }
  0x36   :  { %110 = vrot.lane.b32.xlu1 %v19_v10, %s243_s11  ;;  %108 = vrot.lane.b32.xlu0 %v18_v11, %s243_s11 }
  0x3a   :  { %114 = vrot.lane.b32.xlu1 %v21_v12, %s243_s11  ;;  %112 = vrot.lane.b32.xlu0 %v20_v13, %s243_s11 }
  0x3e   :  { %118 = vrot.lane.b32.xlu1 %v23_v14, %s243_s11  ;;  %116 = vrot.lane.b32.xlu0 %v22_v15, %s243_s11 }
  0x42   :  { %138 = vrot.lane.b32.xlu1 %v9_v3, %s244_s0  ;;  %136 = vrot.lane.b32.xlu0 %v8_v1, %s244_s0 }
  0x46   :  { %142 = vrot.lane.b32.xlu1 %v11_v2, %s244_s0  ;;  %140 = vrot.lane.b32.xlu0 %v10_v0, %s244_s0 }
  0x4a   :  { %146 = vrot.lane.b32.xlu1 %v13_v4, %s244_s0  ;;  %144 = vrot.lane.b32.xlu0 %v12_v5, %s244_s0 }
  0x4e   :  { %150 = vrot.lane.b32.xlu1 %v15_v6, %s244_s0  ;;  %148 = vrot.lane.b32.xlu0 %v14_v7, %s244_s0 }
  0x52   :  { %154 = vrot.lane.b32.xlu1 %v17_v8, %s244_s0  ;;  %152 = vrot.lane.b32.xlu0 %v16_v9, %s244_s0 }
  0x56   :  { %158 = vrot.lane.b32.xlu1 %v19_v10, %s244_s0  ;;  %156 = vrot.lane.b32.xlu0 %v18_v11, %s244_s0 }
  0x5a   :  { %162 = vrot.lane.b32.xlu1 %v21_v12, %s244_s0  ;;  %160 = vrot.lane.b32.xlu0 %v20_v13, %s244_s0 }
  0x5e   :  { %166 = vrot.lane.b32.xlu1 %v23_v14, %s244_s0  ;;  %164 = vrot.lane.b32.xlu0 %v22_v15, %s244_s0 }
  0x74   :  { %v45_v16 = vpop.permute.xlu1 %44  ;;  %v41_v17 = vpop.permute.xlu0 %40 }
  0x78   :  { %v47_v18 = vpop.permute.xlu1 %46  ;;  %v43_v19 = vpop.permute.xlu0 %42 }
  0x7c   :  { %v51_v20 = vpop.permute.xlu1 %50  ;;  %v49_v21 = vpop.permute.xlu0 %48 }
  0x80   :  { %v55_v22 = vpop.permute.xlu1 %54  ;;  %v53_v23 = vpop.permute.xlu0 %52 }
  0x84   :  { %v59_v24 = vpop.permute.xlu1 %58  ;;  %v57_v25 = vpop.permute.xlu0 %56 }
  0x88   :  { %v303_v26 = vpop.permute.xlu1 %62  ;;  %v305_v27 = vpop.permute.xlu0 %60 }
  0x8c   :  { %v307_v28 = vpop.permute.xlu1 %66  ;;  %v309_v29 = vpop.permute.xlu0 %64 }
  0x90   :  { %v311_v30 = vpop.permute.xlu1 %70  ;;  %v313_v31 = vpop.permute.xlu0 %68 }
  0x94   :  { %v91_v32 = vpop.permute.xlu1 %90  ;;  %v89_v33 = vpop.permute.xlu0 %88 }
  0x95   :  { %v186_v48 = vsel %vm184_vm0, %v43_v19, %v91_v32  ;;  %v185_v49 = vsel %vm184_vm0, %v41_v17, %v89_v33 }
  0x98   :  { %v95_v34 = vpop.permute.xlu1 %94  ;;  %v93_v35 = vpop.permute.xlu0 %92 }
  0x99   :  { %v188_v54 = vsel %vm184_vm0, %v47_v18, %v95_v34  ;;  %v187_v55 = vsel %vm184_vm0, %v45_v16, %v93_v35 }
  0x9c   :  { %v99_v36 = vpop.permute.xlu1 %98  ;;  %v97_v37 = vpop.permute.xlu0 %96 }
  0x9d   :  { %v190_v60 = vsel %vm184_vm0, %v51_v20, %v99_v36  ;;  %v189_v61 = vsel %vm184_vm0, %v49_v21, %v97_v37 }
  0xa0   :  { %v103_v38 = vpop.permute.xlu1 %102  ;;  %v101_v39 = vpop.permute.xlu0 %100 }
  0xa1   :  { %v192_v2 = vsel %vm184_vm0, %v55_v22, %v103_v38  ;;  %v191_v3 = vsel %vm184_vm0, %v53_v23, %v101_v39 }
  0xa4   :  { %v107_v40 = vpop.permute.xlu1 %106  ;;  %v105_v41 = vpop.permute.xlu0 %104 }
  0xa5   :  { %v194_v8 = vsel %vm184_vm0, %v59_v24, %v107_v40  ;;  %v193_v9 = vsel %vm184_vm0, %v57_v25, %v105_v41 }
  0xa8   :  { %v111_v42 = vpop.permute.xlu1 %110  ;;  %v109_v43 = vpop.permute.xlu0 %108 }
  0xa9   :  { %v196_v14 = vsel %vm184_vm0, %v303_v26, %v111_v42  ;;  %v195_v15 = vsel %vm184_vm0, %v305_v27, %v109_v43 }
  0xac   :  { %v115_v44 = vpop.permute.xlu1 %114  ;;  %v113_v45 = vpop.permute.xlu0 %112 }
  0xad   :  { %v198_v20 = vsel %vm184_vm0, %v307_v28, %v115_v44  ;;  %v197_v21 = vsel %vm184_vm0, %v309_v29, %v113_v45 }
  0xb0   :  { %v315_v46 = vpop.permute.xlu1 %118  ;;  %v317_v47 = vpop.permute.xlu0 %116 }
  0xb1   :  { %v200_v26 = vsel %vm184_vm0, %v311_v30, %v315_v46  ;;  %v199_v27 = vsel %vm184_vm0, %v313_v31, %v317_v47 }
  0xb4   :  { %v139_v50 = vpop.permute.xlu1 %138  ;;  %v137_v51 = vpop.permute.xlu0 %136 }
  0xb5   :  { %v203_v52 = vsel %vm201_vm1, %v186_v48, %v139_v50  ;;  %v202_v53 = vsel %vm201_vm1, %v185_v49, %v137_v51 }
  0xb6   :  { %220 = vst.msk [vmem:[%s424_s1 + $0x8] sm:$0xff] %vm218_vm2, %v203_v52  ;;  %219 = vst.msk [vmem:[%s424_s1] sm:$0xff] %vm218_vm2, %v202_v53 }
  0xb8   :  { %v143_v56 = vpop.permute.xlu1 %142  ;;  %v141_v57 = vpop.permute.xlu0 %140 }
  0xb9   :  { %v205_v58 = vsel %vm201_vm1, %v188_v54, %v143_v56  ;;  %v204_v59 = vsel %vm201_vm1, %v187_v55, %v141_v57 }
  0xba   :  { %222 = vst.msk [vmem:[%s424_s1 + $0x18] sm:$0xff] %vm218_vm2, %v205_v58  ;;  %221 = vst.msk [vmem:[%s424_s1 + $0x10] sm:$0xff] %vm218_vm2, %v204_v59 }
  0xbc   :  { %v147_v62 = vpop.permute.xlu1 %146  ;;  %v145_v63 = vpop.permute.xlu0 %144 }
  0xbd   :  { %v207_v0 = vsel %vm201_vm1, %v190_v60, %v147_v62  ;;  %v206_v1 = vsel %vm201_vm1, %v189_v61, %v145_v63 }
  0xbe   :  { %224 = vst.msk [vmem:[%s424_s1 + $0x28] sm:$0xff] %vm218_vm2, %v207_v0  ;;  %223 = vst.msk [vmem:[%s424_s1 + $0x20] sm:$0xff] %vm218_vm2, %v206_v1 }
  0xc0   :  { %v151_v4 = vpop.permute.xlu1 %150  ;;  %v149_v5 = vpop.permute.xlu0 %148 }
  0xc1   :  { %v209_v6 = vsel %vm201_vm1, %v192_v2, %v151_v4  ;;  %v208_v7 = vsel %vm201_vm1, %v191_v3, %v149_v5 }
  0xc2   :  { %226 = vst.msk [vmem:[%s424_s1 + $0x38] sm:$0xff] %vm218_vm2, %v209_v6  ;;  %225 = vst.msk [vmem:[%s424_s1 + $0x30] sm:$0xff] %vm218_vm2, %v208_v7 }
  0xc4   :  { %v155_v10 = vpop.permute.xlu1 %154  ;;  %v153_v11 = vpop.permute.xlu0 %152 }
  0xc5   :  { %v211_v12 = vsel %vm201_vm1, %v194_v8, %v155_v10  ;;  %v210_v13 = vsel %vm201_vm1, %v193_v9, %v153_v11 }
  0xc6   :  { %228 = vst.msk [vmem:[%s424_s1 + $0x48] sm:$0xff] %vm218_vm2, %v211_v12  ;;  %227 = vst.msk [vmem:[%s424_s1 + $0x40] sm:$0xff] %vm218_vm2, %v210_v13 }
  0xc8   :  { %v159_v16 = vpop.permute.xlu1 %158  ;;  %v157_v17 = vpop.permute.xlu0 %156 }
  0xc9   :  { %v213_v18 = vsel %vm201_vm1, %v196_v14, %v159_v16  ;;  %v212_v19 = vsel %vm201_vm1, %v195_v15, %v157_v17 }
  0xca   :  { %230 = vst.msk [vmem:[%s424_s1 + $0x58] sm:$0xff] %vm218_vm2, %v213_v18  ;;  %229 = vst.msk [vmem:[%s424_s1 + $0x50] sm:$0xff] %vm218_vm2, %v212_v19 }
  0xcc   :  { %v163_v22 = vpop.permute.xlu1 %162  ;;  %v161_v23 = vpop.permute.xlu0 %160 }
  0xcd   :  { %v215_v24 = vsel %vm201_vm1, %v198_v20, %v163_v22  ;;  %v214_v25 = vsel %vm201_vm1, %v197_v21, %v161_v23 }
  0xce   :  { %232 = vst.msk [vmem:[%s424_s1 + $0x68] sm:$0xff] %vm218_vm2, %v215_v24  ;;  %231 = vst.msk [vmem:[%s424_s1 + $0x60] sm:$0xff] %vm218_vm2, %v214_v25 }
  0xd0   :  { %v167_v28 = vpop.permute.xlu1 %166  ;;  %v165_v29 = vpop.permute.xlu0 %164 }
  0xd1   :  { %v217_v32 = vsel %vm201_vm1, %v200_v26, %v167_v28  ;;  %v216_v33 = vsel %vm201_vm1, %v199_v27, %v165_v29 }
  0xd2   :  { %234 = vst.msk [vmem:[%s424_s1 + $0x78] sm:$0xff] %vm218_vm2, %v217_v32  ;;  %233 = vst.msk [vmem:[%s424_s1 + $0x70] sm:$0xff] %vm218_vm2, %v216_v33 }

</bundles_post_ra>
